<compile_context>
chip_gen: v7x
topology: tpu7x:2x2x1
jax: 0.10.0
libtpu: 0.0.40
codegen_flags: <defaults>
</compile_context>

<pallas_src>
import numpy as np
import jax
import jax.numpy as jnp
from jax import lax
from jax.experimental import pallas as pl
from jax.experimental.pallas import tpu as pltpu


def _round_up(x, m):
    return ((x + m - 1) // m) * m


def _vmem_capacity_bytes():
    try:
        return int(getattr(pltpu.get_tpu_info(), "vmem_capacity_bytes",
                           64 * 1024 * 1024))
    except Exception:
        return 64 * 1024 * 1024


def _make_clip_kernel(block_m, blocks_per_chunk, n_valid, has_pad):
    bm = block_m

    def kernel(scale_ref, img_ref, txt_ref, acc_ref, col_lse_ref,
               col_max8_ref, col_sum8_ref):
        p = pl.program_id(0)          # parallel chunk (megacore axis)
        j = pl.program_id(1)          # sequential row block inside the chunk
        n_cols = txt_ref.shape[1]

        @pl.when(j == 0)
        def _init():
            acc_ref[...] = jnp.zeros_like(acc_ref)
            col_max8_ref[...] = jnp.full_like(col_max8_ref, -jnp.inf)
            col_sum8_ref[...] = jnp.zeros_like(col_sum8_ref)

        scale = scale_ref[0]

        # Single MXU matmul in the input dtype; f32 accumulation. txt is (D, N).
        logits = lax.dot_general(
            img_ref[...], txt_ref[...],
            dimension_numbers=(((1,), (0,)), ((), ())),
            preferred_element_type=jnp.float32)              # (bm, N) f32
        logits = logits * scale                              # one VPU pass

        # ---- row-side (image -> text) log-sum-exp; the only slab exp ---------
        row_max = jnp.max(logits, axis=-1, keepdims=True)                  # (bm, 1)
        p_slab = jnp.exp(logits - row_max)                                 # (bm, N)
        row_lse = row_max + jnp.log(jnp.sum(p_slab, axis=-1, keepdims=True))

        # ---- diagonal logits: the only entries the one-hot KL needs ----------
        row_off = (p * blocks_per_chunk + j) * bm
        col_ids = lax.broadcasted_iota(jnp.int32, (bm, n_cols), 1)
        row_ids = row_off + lax.broadcasted_iota(jnp.int32, (bm, 1), 0)
        diag = jnp.sum(jnp.where(col_ids == row_ids, logits, 0.0),
                       axis=-1, keepdims=True)                             # (bm, 1)

        contrib = row_lse - 2.0 * diag
        if has_pad:
            contrib = jnp.where(row_ids < n_valid, contrib, 0.0)
        acc_ref[...] += jnp.sum(contrib)

        # ---- text-side LSE: online per-column reduction, (8, N) accumulators --
        m_blk = jnp.max(row_max)                                           # scalar
        r = jnp.exp(row_max - m_blk)                                       # (bm, 1)
        if has_pad:
            r = r * (row_ids < n_valid).astype(jnp.float32)
        q = p_slab * r                                                     # exp(logits - m_blk)

        blk_max8 = jnp.max(logits.reshape(bm // 8, 8, n_cols), axis=0)     # (8, N)
        s8 = jnp.sum(q.reshape(bm // 8, 8, n_cols), axis=0)                # (8, N)

        new_max8 = jnp.maximum(col_max8_ref[...], blk_max8)
        col_sum8_ref[...] = (
            col_sum8_ref[...] * jnp.exp(col_max8_ref[...] - new_max8)
            + jnp.exp(m_blk - new_max8 + jnp.log(s8)))
        col_max8_ref[...] = new_max8

        @pl.when(j == pl.num_programs(1) - 1)
        def _finalize():
            cm = col_max8_ref[...]
            cs = col_sum8_ref[...]
            m = jnp.max(cm, axis=0, keepdims=True)                         # (1, N)
            lse = m + jnp.log(jnp.sum(cs * jnp.exp(cm - m),
                                      axis=0, keepdims=True))
            col_lse_ref[...] = lse[None]                                   # (1, 1, N)

    return kernel


def clip_loss(image_features, text_features, logit_scale, *, block_m=None):
    """image_features, text_features: [N, D]; logit_scale: [1] float32 -> scalar loss."""
    N, D = image_features.shape
    assert text_features.shape == (N, D)

    vmem_cap = _vmem_capacity_bytes()
    # leave headroom for compiler-internal scratch; v7x caps near 56 MiB, v5e/v6e ~110 MiB
    vmem_limit = int(max(32 * 1024 * 1024,
                         min(vmem_cap - 8 * 1024 * 1024, 110 * 1024 * 1024)))

    if block_m is None:
        # ~6 live f32 (bm, N) slab temporaries; keep them inside ~1/3 of VMEM
        budget = max(16 * 1024 * 1024, vmem_cap // 3)
        bm = budget // (6 * 4 * max(N, 1))
        bm = int(max(128, min(1024, bm)))
        bm -= bm % 128                       # multiple of 128 feeds the MXU cleanly
        block_m = min(bm, _round_up(N, 8))
    block_m = max(8, (int(block_m) // 8) * 8)

    n_pad = _round_up(N, block_m)
    has_pad = n_pad != N
    img = image_features
    if has_pad:
        img = jnp.pad(img, ((0, n_pad - N), (0, 0)))  # padded rows masked in-kernel

    nblk = n_pad // block_m
    num_chunks = 2 if (nblk >= 2 and nblk % 2 == 0) else 1   # 2 TCs on v7x
    bpc = nblk // num_chunks

    txt_t = text_features.T                  # (D, N): contraction dim on sublanes

    kernel = _make_clip_kernel(block_m, bpc, N, has_pad)
    itemsize = int(image_features.dtype.itemsize)

    acc, col_lse = pl.pallas_call(
        kernel,
        out_shape=(jax.ShapeDtypeStruct((num_chunks, 1, 1), jnp.float32),
                   jax.ShapeDtypeStruct((num_chunks, 1, N), jnp.float32)),
        grid=(num_chunks, bpc),
        in_specs=[
            pl.BlockSpec(memory_space=pltpu.MemorySpace.SMEM),            # logit_scale
            pl.BlockSpec((block_m, D), lambda p, j: (p * bpc + j, 0)),    # image rows
            pl.BlockSpec(memory_space=pltpu.MemorySpace.VMEM),            # full (D, N) text, single-buffered
        ],
        out_specs=(
            pl.BlockSpec((1, 1, 1), lambda p, j: (p, 0, 0)),              # per-chunk acc
            pl.BlockSpec((1, 1, N), lambda p, j: (p, 0, 0)),              # per-chunk col LSE
        ),
        scratch_shapes=[
            pltpu.VMEM((8, N), jnp.float32),   # online column max (folded at finalize)
            pltpu.VMEM((8, N), jnp.float32),   # online column sum(exp)
        ],
        compiler_params=pltpu.CompilerParams(
            dimension_semantics=("parallel", "arbitrary"),
            vmem_limit_bytes=vmem_limit),
        cost_estimate=pl.CostEstimate(
            flops=int(2 * n_pad * N * D),
            transcendentals=int(n_pad * N),
            bytes_accessed=int((n_pad + N) * D * itemsize
                               + 4 * num_chunks * (N + 1))),
    )(logit_scale, img, txt_t)

    # Tiny cross-chunk merge: per-column logsumexp over chunks, then the scalar loss.
    cl = col_lse[:, 0, :]                               # (chunks, N)
    m = jnp.max(cl, axis=0)
    col_total = m + jnp.log(jnp.sum(jnp.exp(cl - m), axis=0))
    return (jnp.sum(acc) + jnp.sum(col_total)) / (2.0 * N)


def clip_loss_ref(image_features, text_features, logit_scale):
    """Pure-JAX reference mirroring the torch forward literally."""
    scale = logit_scale[0]
    lpi = scale * image_features @ text_features.T
    lpt = scale * text_features @ image_features.T
    n = lpi.shape[0]
    labels = jnp.eye(n, dtype=jnp.float32)
    p1 = jax.nn.log_softmax(lpi, axis=-1)
    p2 = jax.nn.log_softmax(lpt, axis=-1)
    loss_a = jnp.sum(-labels * p1) / n   # xlogy(one-hot, one-hot) term is identically 0
    loss_b = jnp.sum(-labels * p2) / n
    return (loss_a + loss_b) / 2.0


# TODO(synk): world_size > 1 branch (gather_features all-gather across devices) is
# not implemented; the module's default world_size == 1 path is what this covers.
# TODO(synk): for very large N (resident text > ~20 MiB) add a second, column-tile
# grid axis so the text operand no longer needs full VMEM residency.

if __name__ == "__main__":
    key = jax.random.PRNGKey(0)
    k1, k2, k3, k4 = jax.random.split(key, 4)

    # Deterministic parameter from the module: ones([]) * log(1 / 0.07)
    logit_scale = jnp.array([np.log(1.0 / 0.07)], dtype=jnp.float32)

    # Case 1: N divisible by block_m; block_m=8 gives a 4-block grid split into
    # 2 parallel chunks (exercises the online column LSE and the chunk merge).
    N, D = 32, 64
    image_features = jax.random.normal(k1, (N, D), dtype=jnp.float32)
    text_features = jax.random.normal(k2, (N, D), dtype=jnp.float32)
    out = jax.block_until_ready(
        clip_loss(image_features, text_features, logit_scale, block_m=8))
    ref = clip_loss_ref(image_features, text_features, logit_scale)
    np.testing.assert_allclose(np.asarray(out), np.asarray(ref), rtol=1e-5, atol=1e-5)

    # Case 2: ragged N (20 -> padded to 24) exercises the row-padding/mask path.
    N2 = 20
    image_features2 = jax.random.normal(k3, (N2, D), dtype=jnp.float32)
    text_features2 = jax.random.normal(k4, (N2, D), dtype=jnp.float32)
    out2 = jax.block_until_ready(
        clip_loss(image_features2, text_features2, logit_scale, block_m=8))
    ref2 = clip_loss_ref(image_features2, text_features2, logit_scale)
    np.testing.assert_allclose(np.asarray(out2), np.asarray(ref2), rtol=1e-5, atol=1e-5)

    print("KERNEL_OK")
</pallas_src>

<mosaic_0001>
module attributes {stable_mosaic.version = 11 : i64} {
  func.func @kernel(%arg0: i32, %arg1: i32, %arg2: memref<1xf32, #tpu.memory_space<smem>>, %arg3: memref<8x64xf32, #tpu.memory_space<vmem>>, %arg4: memref<64x32xf32, #tpu.memory_space<vmem>>, %arg5: memref<1x1x1xf32, #tpu.memory_space<vmem>>, %arg6: memref<1x1x32xf32, #tpu.memory_space<vmem>>, %arg7: memref<8x32xf32, #tpu.memory_space<vmem>>, %arg8: memref<8x32xf32, #tpu.memory_space<vmem>>) attributes {dimension_semantics = [#tpu.dimension_semantics<parallel>, #tpu.dimension_semantics<arbitrary>], iteration_bounds = array<i64: 2, 2>, scalar_prefetch = 0 : i64, scratch_operands = 2 : i64, tpu.core_type = #tpu.core_type<tc>, window_params = [{transform_indices = @transform_0, window_bounds = array<i64: 1>}, {transform_indices = @transform_1, window_bounds = array<i64: 8, 64>}, {pipeline_mode = #tpu.pipeline_mode<synchronous>, transform_indices = @transform_2, window_bounds = array<i64: 64, 32>}, {transform_indices = @transform_3, window_bounds = array<i64: 1, 1, 1>}, {transform_indices = @transform_4, window_bounds = array<i64: 1, 1, 32>}]} {
    %c0_i32 = arith.constant 0 : i32
    %0 = arith.cmpi eq, %arg1, %c0_i32 : i32
    %1 = arith.extui %0 : i1 to i32
    %c0_i32_0 = arith.constant 0 : i32
    %2 = arith.cmpi ne, %1, %c0_i32_0 : i32
    scf.if %2 {
      %cst_31 = arith.constant 0.000000e+00 : f32
      %73 = vector.broadcast %cst_31 : f32 to vector<1x1x1xf32>
      %c0_32 = arith.constant 0 : index
      %c0_33 = arith.constant 0 : index
      %c0_34 = arith.constant 0 : index
      %74 = vector.load %arg5[%c0_32, %c0_33, %c0_34] : memref<1x1x1xf32, #tpu.memory_space<vmem>>, vector<1x1x1xf32>
      tpu.vector_store %arg5[%c0_32, %c0_33, %c0_34], %73 {strides = array<i32>} : memref<1x1x1xf32, #tpu.memory_space<vmem>>, vector<1x1x1xf32>,
      %cst_35 = arith.constant 0xFF800000 : f32
      %75 = vector.broadcast %cst_35 : f32 to vector<8x32xf32>
      %c0_36 = arith.constant 0 : index
      %c0_37 = arith.constant 0 : index
      %76 = vector.load %arg7[%c0_36, %c0_37] : memref<8x32xf32, #tpu.memory_space<vmem>>, vector<8x32xf32>
      tpu.vector_store %arg7[%c0_36, %c0_37], %75 {strides = array<i32>} : memref<8x32xf32, #tpu.memory_space<vmem>>, vector<8x32xf32>,
      %cst_38 = arith.constant 0.000000e+00 : f32
      %77 = vector.broadcast %cst_38 : f32 to vector<8x32xf32>
      %c0_39 = arith.constant 0 : index
      %c0_40 = arith.constant 0 : index
      %78 = vector.load %arg8[%c0_39, %c0_40] : memref<8x32xf32, #tpu.memory_space<vmem>>, vector<8x32xf32>
      tpu.vector_store %arg8[%c0_39, %c0_40], %77 {strides = array<i32>} : memref<8x32xf32, #tpu.memory_space<vmem>>, vector<8x32xf32>,
    } else {
    }
    %c0 = arith.constant 0 : index
    %3 = memref.load %arg2[%c0] : memref<1xf32, #tpu.memory_space<smem>>
    %c0_1 = arith.constant 0 : index
    %c0_2 = arith.constant 0 : index
    %4 = vector.load %arg3[%c0_1, %c0_2] : memref<8x64xf32, #tpu.memory_space<vmem>>, vector<8x64xf32>
    %c0_3 = arith.constant 0 : index
    %c0_4 = arith.constant 0 : index
    %5 = vector.load %arg4[%c0_3, %c0_4] : memref<64x32xf32, #tpu.memory_space<vmem>>, vector<64x32xf32>
    %cst = arith.constant dense<0.000000e+00> : vector<8x32xf32>
    %6 = tpu.matmul %4, %5, %cst {dimension_numbers = #tpu.dot_dimension_numbers<[1], [0], [0], [1], [0, 0, 1, 1], [], []>} : vector<8x64xf32>, vector<64x32xf32>, vector<8x32xf32> -> vector<8x32xf32>
    %7 = vector.broadcast %3 : f32 to vector<8x32xf32>
    %8 = arith.mulf %6, %7 : vector<8x32xf32>
    %cst_5 = arith.constant dense<0xFF800000> : vector<8xf32>
    %9 = vector.multi_reduction <maximumf>, %8, %cst_5 [1] : vector<8x32xf32> to vector<8xf32>
    %10 = vector.shape_cast %9 : vector<8xf32> to vector<8x1xf32>
    %11 = vector.broadcast %10 : vector<8x1xf32> to vector<8x32xf32>
    %12 = arith.subf %8, %11 : vector<8x32xf32>
    %13 = math.exp %12 : vector<8x32xf32>
    %cst_6 = arith.constant dense<0.000000e+00> : vector<8xf32>
    %14 = vector.multi_reduction <add>, %13, %cst_6 [1] : vector<8x32xf32> to vector<8xf32>
    %15 = vector.shape_cast %14 : vector<8xf32> to vector<8x1xf32>
    %16 = math.log %15 : vector<8x1xf32>
    %17 = arith.addf %10, %16 : vector<8x1xf32>
    %c2_i32 = arith.constant 2 : i32
    %18 = arith.muli %arg0, %c2_i32 : i32
    %19 = arith.addi %18, %arg1 : i32
    %c8_i32 = arith.constant 8 : i32
    %20 = arith.muli %19, %c8_i32 : i32
    %21 = tpu.iota {dimensions = array<i32: 1>} : vector<8x32xi32>
    %22 = tpu.iota {dimensions = array<i32: 0>} : vector<8x1xi32>
    %23 = vector.broadcast %20 : i32 to vector<8x1xi32>
    %24 = arith.addi %23, %22 : vector<8x1xi32>
    %25 = vector.broadcast %24 : vector<8x1xi32> to vector<8x32xi32>
    %26 = arith.cmpi eq, %21, %25 : vector<8x32xi32>
    %cst_7 = arith.constant 0.000000e+00 : f32
    %27 = vector.broadcast %cst_7 : f32 to vector<8x32xf32>
    %28 = arith.select %26, %8, %27 : vector<8x32xi1>, vector<8x32xf32>
    %cst_8 = arith.constant dense<0.000000e+00> : vector<8xf32>
    %29 = vector.multi_reduction <add>, %28, %cst_8 [1] : vector<8x32xf32> to vector<8xf32>
    %30 = vector.shape_cast %29 : vector<8xf32> to vector<8x1xf32>
    %cst_9 = arith.constant 2.000000e+00 : f32
    %31 = vector.broadcast %cst_9 : f32 to vector<8x1xf32>
    %32 = arith.mulf %31, %30 : vector<8x1xf32>
    %33 = arith.subf %17, %32 : vector<8x1xf32>
    %c0_10 = arith.constant 0 : index
    %c0_11 = arith.constant 0 : index
    %c0_12 = arith.constant 0 : index
    %34 = vector.load %arg5[%c0_10, %c0_11, %c0_12] : memref<1x1x1xf32, #tpu.memory_space<vmem>>, vector<1x1x1xf32>
    %35 = vector.shape_cast %33 : vector<8x1xf32> to vector<1x8x1xf32>
    %cst_13 = arith.constant dense<0.000000e+00> : vector<1xf32>
    %36 = vector.multi_reduction <add>, %35, %cst_13 [1, 2] : vector<1x8x1xf32> to vector<1xf32>
    %37 = vector.shape_cast %36 : vector<1xf32> to vector<1x1x1xf32>
    %38 = vector.extract %37[0, 0, 0] : f32 from vector<1x1x1xf32>
    %39 = vector.broadcast %38 : f32 to vector<1x1x1xf32>
    %40 = arith.addf %34, %39 : vector<1x1x1xf32>
    %c0_14 = arith.constant 0 : index
    %c0_15 = arith.constant 0 : index
    %c0_16 = arith.constant 0 : index
    %41 = vector.load %arg5[%c0_14, %c0_15, %c0_16] : memref<1x1x1xf32, #tpu.memory_space<vmem>>, vector<1x1x1xf32>
    tpu.vector_store %arg5[%c0_14, %c0_15, %c0_16], %40 {strides = array<i32>} : memref<1x1x1xf32, #tpu.memory_space<vmem>>, vector<1x1x1xf32>,
    %42 = vector.shape_cast %10 : vector<8x1xf32> to vector<1x8x1xf32>
    %cst_17 = arith.constant dense<0xFF800000> : vector<1xf32>
    %43 = vector.multi_reduction <maximumf>, %42, %cst_17 [1, 2] : vector<1x8x1xf32> to vector<1xf32>
    %44 = vector.shape_cast %43 : vector<1xf32> to vector<1x1x1xf32>
    %45 = vector.extract %44[0, 0, 0] : f32 from vector<1x1x1xf32>
    %46 = vector.broadcast %45 : f32 to vector<8x1xf32>
    %47 = arith.subf %10, %46 : vector<8x1xf32>
    %48 = math.exp %47 : vector<8x1xf32>
    %49 = vector.broadcast %48 : vector<8x1xf32> to vector<8x32xf32>
    %50 = arith.mulf %13, %49 : vector<8x32xf32>
    %51 = vector.shape_cast %8 : vector<8x32xf32> to vector<1x8x32xf32>
    %cst_18 = arith.constant dense<0xFF800000> : vector<8x32xf32>
    %52 = vector.multi_reduction <maximumf>, %51, %cst_18 [0] : vector<1x8x32xf32> to vector<8x32xf32>
    %53 = vector.shape_cast %50 : vector<8x32xf32> to vector<1x8x32xf32>
    %cst_19 = arith.constant dense<0.000000e+00> : vector<8x32xf32>
    %54 = vector.multi_reduction <add>, %53, %cst_19 [0] : vector<1x8x32xf32> to vector<8x32xf32>
    %c0_20 = arith.constant 0 : index
    %c0_21 = arith.constant 0 : index
    %55 = vector.load %arg7[%c0_20, %c0_21] : memref<8x32xf32, #tpu.memory_space<vmem>>, vector<8x32xf32>
    %56 = arith.maximumf %55, %52 : vector<8x32xf32>
    %c0_22 = arith.constant 0 : index
    %c0_23 = arith.constant 0 : index
    %57 = vector.load %arg8[%c0_22, %c0_23] : memref<8x32xf32, #tpu.memory_space<vmem>>, vector<8x32xf32>
    %c0_24 = arith.constant 0 : index
    %c0_25 = arith.constant 0 : index
    %58 = vector.load %arg7[%c0_24, %c0_25] : memref<8x32xf32, #tpu.memory_space<vmem>>, vector<8x32xf32>
    %59 = arith.subf %58, %56 : vector<8x32xf32>
    %60 = math.exp %59 : vector<8x32xf32>
    %61 = arith.mulf %57, %60 : vector<8x32xf32>
    %62 = vector.broadcast %45 : f32 to vector<8x32xf32>
    %63 = arith.subf %62, %56 : vector<8x32xf32>
    %64 = math.log %54 : vector<8x32xf32>
    %65 = arith.addf %63, %64 : vector<8x32xf32>
    %66 = math.exp %65 : vector<8x32xf32>
    %67 = arith.addf %61, %66 : vector<8x32xf32>
    %c0_26 = arith.constant 0 : index
    %c0_27 = arith.constant 0 : index
    %68 = vector.load %arg8[%c0_26, %c0_27] : memref<8x32xf32, #tpu.memory_space<vmem>>, vector<8x32xf32>
    tpu.vector_store %arg8[%c0_26, %c0_27], %67 {strides = array<i32>} : memref<8x32xf32, #tpu.memory_space<vmem>>, vector<8x32xf32>,
    %c0_28 = arith.constant 0 : index
    %c0_29 = arith.constant 0 : index
    %69 = vector.load %arg7[%c0_28, %c0_29] : memref<8x32xf32, #tpu.memory_space<vmem>>, vector<8x32xf32>
    tpu.vector_store %arg7[%c0_28, %c0_29], %56 {strides = array<i32>} : memref<8x32xf32, #tpu.memory_space<vmem>>, vector<8x32xf32>,
    %c1_i32 = arith.constant 1 : i32
    %70 = arith.cmpi eq, %arg1, %c1_i32 : i32
    %71 = arith.extui %70 : i1 to i32
    %c0_i32_30 = arith.constant 0 : i32
    %72 = arith.cmpi ne, %71, %c0_i32_30 : i32
    scf.if %72 {
      %c0_31 = arith.constant 0 : index
      %c0_32 = arith.constant 0 : index
      %73 = vector.load %arg7[%c0_31, %c0_32] : memref<8x32xf32, #tpu.memory_space<vmem>>, vector<8x32xf32>
      %c0_33 = arith.constant 0 : index
      %c0_34 = arith.constant 0 : index
      %74 = vector.load %arg8[%c0_33, %c0_34] : memref<8x32xf32, #tpu.memory_space<vmem>>, vector<8x32xf32>
      %cst_35 = arith.constant dense<0xFF800000> : vector<32xf32>
      %75 = vector.multi_reduction <maximumf>, %73, %cst_35 [0] : vector<8x32xf32> to vector<32xf32>
      %76 = vector.shape_cast %75 : vector<32xf32> to vector<1x32xf32>
      %77 = vector.broadcast %76 : vector<1x32xf32> to vector<8x32xf32>
      %78 = arith.subf %73, %77 : vector<8x32xf32>
      %79 = math.exp %78 : vector<8x32xf32>
      %80 = arith.mulf %74, %79 : vector<8x32xf32>
      %cst_36 = arith.constant dense<0.000000e+00> : vector<32xf32>
      %81 = vector.multi_reduction <add>, %80, %cst_36 [0] : vector<8x32xf32> to vector<32xf32>
      %82 = vector.shape_cast %81 : vector<32xf32> to vector<1x32xf32>
      %83 = math.log %82 : vector<1x32xf32>
      %84 = arith.addf %76, %83 : vector<1x32xf32>
      %85 = vector.shape_cast %84 : vector<1x32xf32> to vector<1x1x32xf32>
      %c0_37 = arith.constant 0 : index
      %c0_38 = arith.constant 0 : index
      %c0_39 = arith.constant 0 : index
      %86 = vector.load %arg6[%c0_37, %c0_38, %c0_39] : memref<1x1x32xf32, #tpu.memory_space<vmem>>, vector<1x1x32xf32>
      tpu.vector_store %arg6[%c0_37, %c0_38, %c0_39], %85 {strides = array<i32>} : memref<1x1x32xf32, #tpu.memory_space<vmem>>, vector<1x1x32xf32>,
    } else {
    }
    return
  }
  func.func @transform_0(%arg0: i32, %arg1: i32) -> i32 {
    %c0_i32 = arith.constant 0 : i32
    %c0_i32_0 = arith.constant 0 : i32
    return %c0_i32 : i32
  }
  func.func @transform_1(%arg0: i32, %arg1: i32) -> (i32, i32) {
    %c2_i32 = arith.constant 2 : i32
    %0 = arith.muli %arg0, %c2_i32 : i32
    %1 = arith.addi %0, %arg1 : i32
    %c0_i32 = arith.constant 0 : i32
    %c0_i32_0 = arith.constant 0 : i32
    return %1, %c0_i32 : i32, i32
  }
  func.func @transform_2(%arg0: i32, %arg1: i32) -> (i32, i32) {
    %c0_i32 = arith.constant 0 : i32
    %c0_i32_0 = arith.constant 0 : i32
    %c0_i32_1 = arith.constant 0 : i32
    return %c0_i32, %c0_i32_0 : i32, i32
  }
  func.func @transform_3(%arg0: i32, %arg1: i32) -> (i32, i32, i32) {
    %c0_i32 = arith.constant 0 : i32
    %c0_i32_0 = arith.constant 0 : i32
    %c0_i32_1 = arith.constant 0 : i32
    return %arg0, %c0_i32, %c0_i32_0 : i32, i32, i32
  }
  func.func @transform_4(%arg0: i32, %arg1: i32) -> (i32, i32, i32) {
    %c0_i32 = arith.constant 0 : i32
    %c0_i32_0 = arith.constant 0 : i32
    %c0_i32_1 = arith.constant 0 : i32
    return %arg0, %c0_i32, %c0_i32_0 : i32, i32, i32
  }
}

</mosaic_0001>

<bundles_post_ra>
// kernel: tpu_custom_call.1
= control target key start
LH: loop header
LB: loop body
LE: loop exit
PB: predicated region body
PF: predicated region fallthrough
CT: control target
= control target key end

     0   :  { %s998_s0 = inlined_call_operand.<no memory space> [shape: f32[1], index: 0, kind: input, shape index: {}]   ;;  %s999_s1 = inlined_call_operand.vmem [shape: f32[32,64], index: 1, kind: input, shape index: {}]   ;;  %s1000_s2 = inlined_call_operand.vmem [shape: f32[64,32], index: 2, kind: input, shape index: {}]   ;;  %s1001_s3 = inlined_call_operand.vmem [shape: f32[2,1,1], index: 3, kind: output, shape index: {0}]   ;;  %s1002_s4 = inlined_call_operand.hbm [shape: f32[2,1,32], index: 4, kind: output, shape index: {1}]  }
   0x1   :  { %10 = sst [smem:[#allocation4]] %s998_s0 }
   0x2   :  { %11 = vsyncpa [#allocation6], 0 }
   0x3   :  { %13 = vsyncpa [#allocation6 + $0x1], 0  ;;  %s813_s17 = smov 0   ;;  %s815_s18 = smov 0  }
   0x4   :  { %s817_s19 = smov 0   ;;  %s819_s20 = smov 0  }
   0x5   :  { %s821_s21 = smov 0   ;;  %s823_s22 = smov 0  }
   0x6   :  { %s825_s23 = smov 0   ;;  %s827_s24 = smov 0  }
   0x7 LB: > { %s530_s0 = sadd.s32 4294967295, %s777_s24   ;;  %s531_s25 = sadd.s32 4294967294, %s777_s24   ;;  %s777_s24 = sphi %s827_s24, %s19_s24   ;;  %s773_s23 = sphi %s825_s23, %s1011_s23   ;;  %s769_s22 = sphi %s823_s22, %s1010_s22   ;;  %s765_s21 = sphi %s821_s21, %s1009_s21   ;;  %s761_s20 = sphi %s819_s20, %s1008_s20   ;;  %s757_s19 = sphi %s817_s19, %s1007_s19   ;;  %s753_s18 = sphi %s815_s18, %s1006_s18   ;;  %s749_s17 = sphi %s813_s17, %s1005_s17  }
   0x8   : > { %s28_s26 = sadd.s32 1, %s769_s22  ;;  %s31_s27 = sadd.s32 1, %s773_s23 }
   0x9   : > { %p29_p0 = scmp.ge.s32.totalorder %s28_s26, 2  ;;  %p146_p1 = scmp.ne.s32.totalorder %s757_s19, %s753_s18 }
   0xa   : > { %p147_p2 = scmp.eq.s32.totalorder %s530_s0, 3  ;;  %p152_p4 = scmp.ne.s32.totalorder %s753_s18, %s749_s17 }
   0xb   : > { %s1013_s26 = smov (%p29_p0, %s28_s26), 0  ;;  %s1015_s27 = smov (!%p29_p0, %s31_s27), %s773_s23 }
   0xc   : > { %p862_p3 = por %p147_p2, %p146_p1  ;;  %p33_p5 = scmp.ge.s32.totalorder %s1015_s27, 2 }
   0xd   : > { %p153_p6 = scmp.eq.s32.totalorder %s531_s25, 3  ;;  %p536_p7 = scmp.ge.s32.totalorder %s777_s24, 1 }
   0xe   : > { %p188_p8 = scmp.lt.s32.totalorder %s777_s24, 5  ;;  %s1017_s27 = smov (%p33_p5, %s1015_s27), 0 }
   0xf   : > { %p872_p9 = por %p153_p6, %p152_p4  ;;  %s133_s30 = ssub.s32 %s773_s23, %s1017_s27 }
  0x10   : > { %p189_p10 = pnand %p536_p7, %p188_p8  ;;  %s136_s5 = sadd.s32 1, %s757_s19 }
  0x11   : > { %p134_p11 = scmp.eq.s32.totalorder %s133_s30, 0  ;;  %s215_s7 = sand.u32 (!%p189_p10), 1, %s753_s18  }
  0x12   : > { %192 = sbr.rel (%p189_p10) target bundleno = 901 (0x385), region = 32  ;;  %s537_s8 = sshll.u32 (!%p189_p10), %s765_s21, 1 }
  0x13   : > { %s880_s6 = scalar_select %p134_p11, %s757_s19, %s136_s5  }
  0x14   : > { %s885_s9 = sadd.s32 (!%p189_p10), %s761_s20, %s537_s8  ;;  %p225_p13 = scmp.lt.s32.totalorder (!%p189_p10), %s765_s21, 1 }
  0x15   : > { %p219_p12 = scmp.lt.s32.totalorder (!%p189_p10), %s885_s9, 3  ;;  %s903_s30 = scalar_lea.vmem (!%p189_p10), [#allocation5], %s215_s7 }
  0x16   : > { %p539_p0 = scmp.ne.s32.totalorder (!%p189_p10), %s761_s20, 0 }
  0x19   : > { %s220_s10 = scalar_select %p219_p12, %s885_s9, 3 }
  0x1a   : > { %s226_s11 = scalar_select %p225_p13, %s765_s21, 1 }
  0x1b   : > { %s538_s12 = sshll.u32 %s220_s10, 3  ;;  %231 = sbr.rel (%p539_p0) target bundleno = 34 (0x22), region = 36  ;;  %vm232_vm0 = vcmask (!%p539_p0), 0   ;;  %vm234_vm1 = vcmask (!%p539_p0), 261120   ;;  %v779_v0 = vmov (!%p539_p0), 0.0   ;;  %v780_v1 = vmov (!%p539_p0), -inf  }
  0x1c   : > { %s894_s15 = scalar_lea.vmem %s999_s1, %s538_s12  ;;  %s899_s25 = scalar_lea.vmem %s1001_s3, %s226_s11  ;;  %235 = vst.msk [vmem:[#allocation2] sm:$0xff] (!%p539_p0), %vm234_vm1, %v780_v1  ;;  %236 = vst.msk [vmem:[#allocation3] sm:$0xff] (!%p539_p0), %vm234_vm1, %v779_v0 }
  0x1d   : > { %233 = vst.msk [vmem:[%s899_s25] sm:$0x1] (!%p539_p0), %vm232_vm0, %v779_v0 }
  0x22 PF: > { %v239_v2 = vld [vmem:[%s1000_s2] sm:$0xff]  ;;  %v240_v3 = vld [vmem:[%s1000_s2 + $0x8] sm:$0xff]  ;;  %v241_v4 = vld [vmem:[%s1000_s2 + $0x10] sm:$0xff]  ;;  %v781_v5 = vmov 0.0|0.0   ;;  %vm782_vm2 = vmmov 0   ;;  %v783_v8 = vmov 0.0   ;;  %v339_v17 = vlaneseq }
  0x23   : > { %575 = vmatprep.subr.bf16.mxu0 %v781_v5  ;;  %v576_v6 = vpack.c.bf16 %v240_v3, %v239_v2  ;;  %v242_v7 = vld [vmem:[%s1000_s2 + $0x18] sm:$0xff]  ;;  %572 = vmatprep.mubr.msk.f32.mxu0 %vm782_vm2, %v783_v8  ;;  %v243_v10 = vld [vmem:[%s1000_s2 + $0x20] sm:$0xff]  ;;  %v244_v11 = vld [vmem:[%s1000_s2 + $0x28] sm:$0xff]  ;;  %vm247_vm3 = vcmask 523264   ;;  %s237_s16 = sld [smem:[#allocation4]]  ;;  %s542_s0 = sshll.u32 %s885_s9, 3 }
  0x24   : > { %v579_v9 = vpack.c.bf16 %v242_v7, %v241_v4  ;;  %v582_v12 = vpack.c.bf16 %v244_v11, %v243_v10  ;;  %v245_v13 = vld [vmem:[%s1000_s2 + $0x30] sm:$0xff]  ;;  %v246_v14 = vld [vmem:[%s1000_s2 + $0x38] sm:$0xff]  ;;  %v238_v16 = vld [vmem:[%s894_s15] sm:$0xff]  ;;  %v342_v18 = vshrl.u32 %v339_v17, 7  ;;  %v343_v19 = vstv %s542_s0  ;;  %p543_p1 = scmp.ne.s32.totalorder %s761_s20, 1 }
  0x25   : > { %577 = vmatpush3.bf16.msra.mxu0 %v576_v6  ;;  %v585_v15 = vpack.c.bf16 %v246_v14, %v245_v13  ;;  %v340_v20 = vand.u32 127, %v339_v17  ;;  %vm323_vm4 = vcmask 261120   ;;  %v381_v24 = vld [vmem:[#allocation2] sm:$0xff]  ;;  %vm353_vm6 = vcmask 7168  }
  0x26   : > { %578 = vmatprep.subr.bf16.mxu0 %v781_v5  ;;  %v344_v21 = vadd.s32 %v343_v19, %v342_v18  ;;  %v352_v57 = vld [vmem:[%s899_s25] sm:$0x1]  ;;  %vm366_vm7 = vcmask 0   ;;  %vm424_vm8 = vcmask (!%p543_p1), 253952  }
  0x28   : > { %vm345_vm5 = vcmp.eq.s32.totalorder %v340_v20, %v344_v21 }
  0x29   : > { %580 = vmatpush3.bf16.msra.mxu0 %v579_v9  ;;  %v321_v22 = vstv %s237_s16  ;;  %v383_v9 = vld [vmem:[#allocation3] sm:$0xff] }
  0x2a   : > { %581 = vmatprep.subr.bf16.mxu0 %v781_v5 }
  0x2d   : > { %583 = vmatpush3.bf16.msra.mxu0 %v582_v12 }
  0x2e   : > { %584 = vmatprep.subr.bf16.mxu0 %v781_v5 }
  0x31   : > { %586 = vmatpush3.bf16.msra.mxu0 %v585_v15 }
  0x34   : > { %573 = vmatmul.mubr.msk.f32.vlgmr.msra.gmra.mrb[0].mxu0 %vm247_vm3, %v238_v16 }
 0x107   : > { %v317_v23 = vpop.f32.mrb[0].mxu0 }
 0x108   : > { %v322_v25 = vmul.f32 %v321_v22, %v317_v23  ;;  %v574_v26 = vpop.f32.mrb[1].mxu0 }
 0x10a   : > { %v324_v27 = vsel %vm323_vm4, %v322_v25, -inf  ;;  %v346_v28 = vsel %vm345_vm5, %v322_v25, 0.0  ;;  %v382_v29 = vmax.f32 %v381_v24, %v322_v25 }
 0x10b   : > { %325 = vmax.xlane.f32.xlu0 %v324_v27  ;;  %v347_v30 = vsel %vm323_vm4, %v346_v28, 0.0 }
 0x10c   : > { %348 = vadd.xlane.f32.xlu1 %v347_v30  ;;  %396 = vst.msk [vmem:[#allocation2] sm:$0xff] %vm323_vm4, %v382_v29  ;;  %v384_v1 = vsub.f32 %v381_v24, %v382_v29 }
 0x10e   : > { %v385_v2 = vmul.f32 1.442695, %v384_v1 }
 0x113   : > { %v401_v13 = vld [vmem:[#allocation2] sm:$0xff] (!%p543_p1) }
 0x114   : > { %v403_v14 = vsel (!%p543_p1), %vm323_vm4, %v401_v13, -inf }
 0x115   : > { %v404_v15 = vrot.slane (!%p543_p1), %v403_v14, 4 }
 0x117   : > { %v405_v16 = vmax.f32 (!%p543_p1), %v403_v14, %v404_v15 }
 0x119   : > { %v406_v17 = vrot.slane (!%p543_p1), %v405_v16, 2 }
 0x11b   : > { %v407_v18 = vmax.f32 (!%p543_p1), %v405_v16, %v406_v17 }
 0x11d   : > { %v408_v19 = vrot.slane (!%p543_p1), %v407_v18, 1 }
 0x11f   : > { %v409_v20 = vmax.f32 (!%p543_p1), %v407_v18, %v408_v19 }
 0x121   : > { %v410_v21 = vsub.f32 (!%p543_p1), %v401_v13, %v409_v20 }
 0x123   : > { %v411_v22 = vmul.f32 (!%p543_p1), 1.442695, %v410_v21 }
 0x198   : > { %v326_v31 = vpop.xlane.xlu0 %325 }
 0x199   : > { %v327_v32 = vsub.f32 %v322_v25, %v326_v31  ;;  %v349_v38 = vpop.xlane.xlu1 %348  ;;  %v368_v44 = vrot.slane %v326_v31, 4 }
 0x19a   : > { %v350_v40 = vmul.f32 2.0, %v349_v38 }
 0x19b   : > { %v328_v33 = vmul.f32 1.442695, %v327_v32  ;;  %v369_v45 = vmax.f32 %v326_v31, %v368_v44 }
 0x19d   : > { %667 = vpow2.f32 %v328_v33  ;;  %v370_v47 = vrot.slane %v369_v45, 2 }
 0x19f   : > { %v371_v50 = vmax.f32 %v369_v45, %v370_v47 }
 0x1a1   : > { %v372_v53 = vrot.slane %v371_v50, 1 }
 0x1a3   : > { %v373_v56 = vmax.f32 %v371_v50, %v372_v53 }
 0x1a7   : > { %v668_v34 = vpop.eup %667 }
 0x1a8   : > { %v330_v35 = vsel %vm323_vm4, %v668_v34, 0.0 }
 0x1a9   : > { %331 = vadd.xlane.f32.xlu0 %v330_v35 }
 0x236   : > { %v332_v36 = vpop.xlane.xlu0 %331 }
 0x237   : > { %669 = vlog2.f32 %v332_v36 }
 0x241   : > { %v670_v37 = vpop.eup %669 }
 0x242   : > { %v334_v39 = vmul.f32 0.6931472, %v670_v37 }
 0x244   : > { %v335_v41 = vadd.f32 %v334_v39, %v326_v31 }
 0x246   : > { %v351_v42 = vsub.f32 %v335_v41, %v350_v40 }
 0x248   : > { %v354_v43 = vsel %vm353_vm6, %v351_v42, 0.0 }
 0x249   : > { %355 = vadd.xlane.f32.xlu1 %v354_v43 }
 0x2d6   : > { %v356_v46 = vpop.xlane.xlu1 %355 }
 0x2d7   : > { %v357_v48 = vrot.slane %v356_v46, 4 }
 0x2d9   : > { %v358_v49 = vadd.f32 %v357_v48, %v356_v46 }
 0x2db   : > { %v359_v51 = vrot.slane %v358_v49, 2 }
 0x2dd   : > { %v360_v52 = vadd.f32 %v359_v51, %v358_v49 }
 0x2df   : > { %v361_v54 = vrot.slane %v360_v52, 1 }
 0x2e1   : > { %v362_v55 = vadd.f32 %v361_v54, %v360_v52 }
 0x2e3   : > { %587 = vpush %v362_v55 }
 0x2e4   : > { %589 = vpush %v373_v56 }
 0x314   : > { %s588_s9 = spop %587 }
 0x315   : > { %v364_v58 = vstv %s588_s9  ;;  %s590_s15 = spop %589 }
 0x316   : > { %v365_v59 = vadd.f32 %v364_v58, %v352_v57  ;;  %v375_v60 = vstv %s590_s15 }
 0x317   : > { %v376_v61 = vsub.f32 %v326_v31, %v375_v60  ;;  %v388_v4 = vsub.f32 %v375_v60, %v382_v29 }
 0x318   : > { %367 = vst.msk [vmem:[%s899_s25] sm:$0x1] %vm366_vm7, %v365_v59 }
 0x319   : > { %v377_v62 = vmul.f32 1.442695, %v376_v61 }
 0x31b   : > { %671 = vpow2.f32 %v377_v62 }
 0x325   : > { %v672_v63 = vpop.eup %671 }
 0x326   : > { %v379_v0 = vmul.f32 %v672_v63, %v668_v34 }
 0x328   : > { %673 = vlog2.f32 %v379_v0 }
 0x329   : > { %675 = vpow2.f32 %v385_v2 }
 0x332   : > { %v674_v3 = vpop.eup %673 }
 0x333   : > { %v390_v5 = vmul.f32 0.6931472, %v674_v3  ;;  %v676_v8 = vpop.eup %675 }
 0x334   : > { %v387_v10 = vmul.f32 %v676_v8, %v383_v9 }
 0x335   : > { %v391_v6 = vadd.f32 %v390_v5, %v388_v4 }
 0x337   : > { %v392_v7 = vmul.f32 1.442695, %v391_v6 }
 0x339   : > { %677 = vpow2.f32 %v392_v7 }
 0x33a   : > { %679 = vpow2.f32 (!%p543_p1), %v411_v22 }
 0x340   : > { %400 = sbr.rel (%p543_p1) target bundleno = 877 (0x36d), region = 40 }
 0x343   : > { %v678_v11 = vpop.eup %677 }
 0x344   : > { %v394_v12 = vadd.f32 %v678_v11, %v387_v10  ;;  %v680_v24 = vpop.eup (!%p543_p1), %679 }
 0x346   : > { %395 = vst.msk [vmem:[#allocation3] sm:$0xff] %vm323_vm4, %v394_v12 }
 0x34d   : > { %v402_v23 = vld [vmem:[#allocation3] sm:$0xff] }
 0x34e   : > { %v413_v25 = vmul.f32 %v680_v24, %v402_v23 }
 0x350   : > { %v414_v26 = vsel %vm323_vm4, %v413_v25, 0.0 }
 0x351   : > { %v415_v27 = vrot.slane %v414_v26, 4 }
 0x353   : > { %v416_v28 = vadd.f32 %v415_v27, %v414_v26 }
 0x355   : > { %v417_v29 = vrot.slane %v416_v28, 2 }
 0x357   : > { %v418_v30 = vadd.f32 %v417_v29, %v416_v28 }
 0x359   : > { %v419_v31 = vrot.slane %v418_v30, 1 }
 0x35b   : > { %v420_v32 = vadd.f32 %v419_v31, %v418_v30 }
 0x35d   : > { %681 = vlog2.f32 %v420_v32 }
 0x367   : > { %v682_v33 = vpop.eup %681 }
 0x368   : > { %v422_v34 = vmul.f32 0.6931472, %v682_v33 }
 0x36a   : > { %v423_v35 = vadd.f32 %v422_v34, %v409_v20 }
 0x36c   : > { %425 = vst.msk [vmem:[%s903_s30] sm:$0x1] %vm424_vm8, %v423_v35 }
 0x36d PF: > { %s544_s20 = sshll.u32 %s765_s21, 4  ;;  %s445_s10 = sshll.u32 %s903_s30, 4  ;;  %s446_s10 = int_to_ptr.vmem [resolvable:$true] %s445_s10 }
 0x36e   : > { %s948_s8 = scalar_lea.hbm %s1002_s4, %s544_s20  ;;  %s430_s11 = scalar_lea.sflag [#allocation6], %s215_s7 }
 0x36f   : > { %s683_s12 = scalar_lea.vmem %s446_s10, 16  ;;  %s784_s13 = smov [#allocation5]  }
 0x370   : > { %p684_p2 = scmp.ne.s32.totalorder %s446_s10, %s683_s12  ;;  %s687_s14 = sshll.u32 %s784_s13, 4  ;;  %s688_s14 = int_to_ptr.vmem [resolvable:$false] %s687_s14 }
 0x371   : > { %s689_s16 = scalar_lea.vmem %s688_s14, 32  ;;  %p690_p6 = scmp.lt.s32.totalorder %s446_s10, %s688_s14 }
 0x372   : > { %p685_p4 = pnand %p684_p2, %p862_p3  ;;  %p691_p7 = scmp.lt.s32.totalorder %s689_s16, %s683_s12 }
 0x374   : > { %p686_p5 = pneg %p685_p4  ;;  %p692_p8 = por %p691_p7, %p690_p6 }
 0x376   : > { %p693_p10 = pnand %p692_p8, %p686_p5 }
 0x378   : > { %696 = shalt.err (!%p693_p10)
}
 0x379   : > { %s697_s21 = scalar_lea.hbm %s948_s8, 16  ;;  %s701_s0 = scalar_lea.hbm %s1002_s4, 32 }
 0x37a   : > { %p698_p11 = scmp.ne.s32.totalorder %s948_s8, %s697_s21  ;;  %p702_p0 = scmp.lt.u32.totalorder %s948_s8, %s1002_s4 }
 0x37b   : > { %p703_p1 = scmp.lt.u32.totalorder %s701_s0, %s697_s21  ;;  %p705_p4 = scmp.lt.u32.totalorder %s697_s21, %s948_s8 }
 0x37c   : > { %p699_p12 = pnand %p698_p11, %p862_p3 }
 0x37d   : > { %p704_p2 = por %p703_p1, %p702_p0 }
 0x37e   : > { %p700_p13 = pneg %p699_p12 }
 0x37f   : > { %p706_p5 = por %p705_p4, %p704_p2 }
 0x381   : > { %p707_p6 = pnand %p706_p5, %p700_p13 }
 0x383   : > { %710 = shalt.err (!%p707_p6)
}
 0x384   : > { %591 = dma.vmem_to_hbm [thread:$0]  (%p862_p3), %s446_s10, 16, %s948_s8, %s430_s11  }
 0x385 PF: > { %p597_p7 = scmp.ge.s32.totalorder %s777_s24, 2  ;;  %s463_s20 = sand.u32 1, %s749_s17  }
 0x386   : > { %s464_s25 = scalar_lea.sflag [#allocation6], %s463_s20 }
 0x387   : > { %p594_p8 = pnand %p597_p7, %p872_p9 }
 0x389   : > { %744 = dma.done.wait (!%p594_p8), %s464_s25, 16  }
 0x38a   : > { %746 = vsyncadd (!%p594_p8), %s464_s25, 4294967280  ;;  %s19_s24 = sadd.s32 1, %s777_s24   ;;  %s1005_s17 = smov %s753_s18 }
 0x38b   : > { %p16_p10 = scmp.ge.s32.totalorder %s19_s24, 6   ;;  %s1006_s18 = smov %s757_s19 }
 0x38c   : > { %s1007_s19 = smov %s880_s6  ;;  %s1008_s20 = smov %s769_s22 }
 0x38d   : > { %s1009_s21 = smov %s773_s23  ;;  %s1010_s22 = smov %s1013_s26 }
 0x38e   : > { %s1011_s23 = smov %s1017_s27  ;;  %18 = sbr.rel (!%p16_p10) target bundleno = 7 (0x7), region = 87 }
 0x395   :  { %468 = vsyncpa [#allocation6], 1 }
 0x396   :  { %470 = vsyncpa [#allocation6 + $0x1], 1 }

</bundles_post_ra>
